<compile_context>
chip_gen: v6e
topology: v6e:2x2x1
jax: 0.10.0
libtpu: 0.0.40
codegen_flags: <defaults>
</compile_context>

<pallas_src>
import functools

import jax
import jax.numpy as jnp
from jax.experimental import pallas as pl
from jax.experimental.pallas import tpu as pltpu

_LANE = 128  # lane width: output feature dim padded to a multiple of this


def _round_up(x, m):
    return ((x + m - 1) // m) * m


def _representation_kernel(x_ref, w_ref, b_ref, o_ref):
    # MXU matmul with f32 accumulation, VPU bias add, EUP tanh; cast on store.
    acc = jnp.dot(x_ref[...], w_ref[...], preferred_element_type=jnp.float32)
    acc = acc + b_ref[...]                      # [TB, N_pad] + [1, N_pad]
    o_ref[...] = jnp.tanh(acc).astype(o_ref.dtype)


def prepare_params(w, b):
    """One-time parameter preparation (do at init, not per call).

    w : [hidden, obs_dim]  (PyTorch nn.Linear layout)
    b : [hidden]
    Returns:
      w_t   : [obs_dim, n_pad]  transposed weight, N zero-padded to mult of 128
      b_pad : [1, n_pad]        zero-padded bias
    """
    hidden, obs_dim = w.shape
    n_pad = _round_up(max(hidden, _LANE), _LANE)
    w_t = jnp.zeros((obs_dim, n_pad), w.dtype).at[:, :hidden].set(w.T)
    b_pad = jnp.zeros((1, n_pad), b.dtype).at[0, :hidden].set(b)
    return w_t, b_pad


@functools.partial(jax.jit, static_argnames=("hidden", "block_b"))
def representation_forward(x, w_t, b_pad, *, hidden, block_b=1024):
    """y = tanh(x @ W^T + b) for x: [B, obs_dim] (f32 or bf16)."""
    B, obs_dim = x.shape
    k, n_pad = w_t.shape
    assert k == obs_dim

    # Sublane granularity depends on dtype: 8 rows for f32, 16 for bf16.
    sub = 16 if x.dtype == jnp.bfloat16 else 8

    # Batch tile: multiple of sublane; large enough to amortize per-step
    # overhead, capped so non-trivial batches still give >= 2 grid steps
    # (megacore sharding on v7x, pipelining elsewhere).
    tb = min(block_b, _round_up(B, sub))
    if B >= 2 * sub:
        tb = min(tb, _round_up(pl.cdiv(B, 2), sub))
    tb = max(sub, (tb // sub) * sub)
    grid = (pl.cdiv(B, tb),)

    out = pl.pallas_call(
        _representation_kernel,
        out_shape=jax.ShapeDtypeStruct((B, n_pad), x.dtype),
        grid_spec=pl.GridSpec(
            grid=grid,
            in_specs=[
                # x streamed over the batch axis; last dim == full obs_dim
                # (no K padding, no wrapper copy).
                pl.BlockSpec((tb, obs_dim), lambda i: (i, 0)),
                # W^T and bias: constant index_map -> resident in VMEM.
                pl.BlockSpec((obs_dim, n_pad), lambda i: (0, 0)),
                pl.BlockSpec((1, n_pad), lambda i: (0, 0)),
            ],
            out_specs=pl.BlockSpec((tb, n_pad), lambda i: (i, 0)),
        ),
        compiler_params=pltpu.CompilerParams(
            # Batch grid steps are independent -> megacore sharding on v7x.
            dimension_semantics=("parallel",),
        ),
    )(x, w_t, b_pad)

    # Only slice when the feature dim actually had to be padded
    # (skipped at the default hidden=128 -> no extra output copy).
    if n_pad != hidden:
        out = out[:, :hidden]
    return out


if __name__ == "__main__":
    # Small shapes consistent with the module (hidden=128 is the default).
    batch, obs_dim, hidden = 256, 32, 128

    key = jax.random.PRNGKey(0)
    kx, kw, kb = jax.random.split(key, 3)

    # Deterministic init mimicking nn.Linear's U(-1/sqrt(fan_in), 1/sqrt(fan_in)).
    bound = 1.0 / (obs_dim ** 0.5)
    w = jax.random.uniform(kw, (hidden, obs_dim), jnp.float32, -bound, bound)
    b = jax.random.uniform(kb, (hidden,), jnp.float32, -bound, bound)
    x = jax.random.normal(kx, (batch, obs_dim), jnp.float32)

    # One-time padded parameter preparation.
    w_t, b_pad = prepare_params(w, b)

    # f32 path (v5e-friendly). batch=256 -> tb=128, grid=(2,).
    y = representation_forward(x, w_t, b_pad, hidden=hidden)
    y = jax.block_until_ready(y)

    y_ref = jnp.tanh(x @ w.T + b)
    assert y.shape == (batch, hidden)
    assert jnp.allclose(y, y_ref, atol=1e-5, rtol=1e-5)

    # bf16 I/O path (v6e / v7x): halves activation HBM traffic; f32 accumulate
    # inside the kernel, cast only on the store.
    y_bf16 = representation_forward(x.astype(jnp.bfloat16), w_t, b_pad, hidden=hidden)
    y_bf16 = jax.block_until_ready(y_bf16)
    assert y_bf16.dtype == jnp.bfloat16
    assert jnp.allclose(y_bf16.astype(jnp.float32), y_ref, atol=3e-2, rtol=3e-2)

    print("KERNEL_OK")
</pallas_src>

<mosaic_0001>
module attributes {stable_mosaic.version = 11 : i64} {
  func.func @_representation_kernel(%arg0: i32, %arg1: memref<128x32xf32, #tpu.memory_space<vmem>>, %arg2: memref<32x128xf32, #tpu.memory_space<vmem>>, %arg3: memref<1x128xf32, #tpu.memory_space<vmem>>, %arg4: memref<128x128xf32, #tpu.memory_space<vmem>>) attributes {dimension_semantics = [#tpu.dimension_semantics<parallel>], iteration_bounds = array<i64: 2>, scalar_prefetch = 0 : i64, scratch_operands = 0 : i64, tpu.core_type = #tpu.core_type<tc>, window_params = [{transform_indices = @transform_0, window_bounds = array<i64: 128, 32>}, {pipeline_mode = #tpu.pipeline_mode<synchronous>, transform_indices = @transform_1, window_bounds = array<i64: 32, 128>}, {pipeline_mode = #tpu.pipeline_mode<synchronous>, transform_indices = @transform_2, window_bounds = array<i64: 1, 128>}, {transform_indices = @transform_3, window_bounds = array<i64: 128, 128>}]} {
    %c0 = arith.constant 0 : index
    %c0_0 = arith.constant 0 : index
    %0 = vector.load %arg1[%c0, %c0_0] : memref<128x32xf32, #tpu.memory_space<vmem>>, vector<128x32xf32>
    %c0_1 = arith.constant 0 : index
    %c0_2 = arith.constant 0 : index
    %1 = vector.load %arg2[%c0_1, %c0_2] : memref<32x128xf32, #tpu.memory_space<vmem>>, vector<32x128xf32>
    %cst = arith.constant dense<0.000000e+00> : vector<128x128xf32>
    %2 = tpu.matmul %0, %1, %cst {dimension_numbers = #tpu.dot_dimension_numbers<[1], [0], [0], [1], [0, 0, 1, 1], [], []>} : vector<128x32xf32>, vector<32x128xf32>, vector<128x128xf32> -> vector<128x128xf32>
    %c0_3 = arith.constant 0 : index
    %c0_4 = arith.constant 0 : index
    %3 = vector.load %arg3[%c0_3, %c0_4] : memref<1x128xf32, #tpu.memory_space<vmem>>, vector<1x128xf32>
    %4 = vector.broadcast %3 : vector<1x128xf32> to vector<128x128xf32>
    %5 = arith.addf %2, %4 : vector<128x128xf32>
    %6 = math.tanh %5 : vector<128x128xf32>
    %c0_5 = arith.constant 0 : index
    %c0_6 = arith.constant 0 : index
    %7 = vector.load %arg4[%c0_5, %c0_6] : memref<128x128xf32, #tpu.memory_space<vmem>>, vector<128x128xf32>
    tpu.vector_store %arg4[%c0_5, %c0_6], %6 {strides = array<i32>} : memref<128x128xf32, #tpu.memory_space<vmem>>, vector<128x128xf32>,
    return
  }
  func.func @transform_0(%arg0: i32) -> (i32, i32) {
    %c0_i32 = arith.constant 0 : i32
    %c0_i32_0 = arith.constant 0 : i32
    return %arg0, %c0_i32 : i32, i32
  }
  func.func @transform_1(%arg0: i32) -> (i32, i32) {
    %c0_i32 = arith.constant 0 : i32
    %c0_i32_0 = arith.constant 0 : i32
    %c0_i32_1 = arith.constant 0 : i32
    return %c0_i32, %c0_i32_0 : i32, i32
  }
  func.func @transform_2(%arg0: i32) -> (i32, i32) {
    %c0_i32 = arith.constant 0 : i32
    %c0_i32_0 = arith.constant 0 : i32
    %c0_i32_1 = arith.constant 0 : i32
    return %c0_i32, %c0_i32_0 : i32, i32
  }
  func.func @transform_3(%arg0: i32) -> (i32, i32) {
    %c0_i32 = arith.constant 0 : i32
    %c0_i32_0 = arith.constant 0 : i32
    return %arg0, %c0_i32 : i32, i32
  }
}

</mosaic_0001>

<bundles_post_ra>
// kernel: representation_forward.1
= control target key start
LH: loop header
LB: loop body
LE: loop exit
PB: predicated region body
PF: predicated region fallthrough
CT: control target
= control target key end

     0   :  { %8 = vsyncpa [#allocation3], 0  ;;  %s922_s0 = inlined_call_operand.vmem [shape: f32[256,32], index: 0, kind: input, shape index: {}]   ;;  %s923_s1 = inlined_call_operand.vmem [shape: f32[32,128], index: 1, kind: input, shape index: {}]   ;;  %s924_s2 = inlined_call_operand.vmem [shape: f32[1,128], index: 2, kind: input, shape index: {}]   ;;  %s925_s3 = inlined_call_operand.hbm [shape: f32[256,128], index: 3, kind: output, shape index: {}]  }
   0x1   :  { %10 = vsyncpa [#allocation3 + $0x1], 0  ;;  %s749_s12 = smov 0   ;;  %s751_s13 = smov 0  }
   0x2   :  { %s753_s14 = smov 0   ;;  %s755_s15 = smov 0  }
   0x3 LB: > { %s770_s16 = sadd.s32 4294967295, %s724_s15   ;;  %s501_s17 = sadd.s32 4294967294, %s724_s15   ;;  %s724_s15 = sphi %s755_s15, %s931_s15   ;;  %s720_s14 = sphi %s753_s14, %s930_s14   ;;  %s716_s13 = sphi %s751_s13, %s929_s13   ;;  %s712_s12 = sphi %s749_s12, %s928_s12  }
   0x4   : > { %s774_s18 = sadd.s32 1, %s724_s15   ;;  %s91_s19 = sadd.s32 1, %s720_s14 }
   0x5   : > { %s88_s20 = ssub.s32 %s724_s15, %s774_s18  ;;  %p101_p0 = scmp.ne.s32.totalorder %s720_s14, %s716_s13 }
   0x6   : > { %p89_p1 = scmp.eq.s32.totalorder %s88_s20, 0  ;;  %p102_p2 = scmp.eq.s32.totalorder %s770_s16, 1 }
   0x7   : > { %p107_p3 = scmp.ne.s32.totalorder %s716_s13, %s712_s12  ;;  %p108_p4 = scmp.eq.s32.totalorder %s501_s17, 1 }
   0x8   : > { %s785_s21 = scalar_select %p89_p1, %s720_s14, %s91_s19  }
   0x9   : > { %p787_p5 = por %p102_p2, %p101_p0  ;;  %p791_p6 = por %p108_p4, %p107_p3 }
   0xa   : > { %p504_p7 = scmp.ge.s32.totalorder %s724_s15, 1  ;;  %p141_p8 = scmp.lt.s32.totalorder %s724_s15, 3 }
   0xc   : > { %p142_p9 = pnand %p504_p7, %p141_p8 }
   0xd   : > { %s506_s28 = sshll.u32 (!%p142_p9), %s770_s16, 4  ;;  %s162_s17 = sand.u32 (!%p142_p9), 1, %s716_s13  }
   0xe   : > { %145 = sbr.rel (%p142_p9) target bundleno = 267 (0x10b), region = 32  ;;  %p166_p10 = scmp.lt.s32.totalorder (!%p142_p9), %s506_s28, 31 }
   0xf   : > { %s505_s19 = sshll.u32 (!%p142_p9), %s162_s17, 7  ;;  %s530_s24 = sshll.u32 (!%p142_p9), %s770_s16, 11 }
  0x10   : > { %s853_s20 = scalar_lea.vmem (!%p142_p9), [#allocation2], %s505_s19  ;;  %s882_s16 = scalar_lea.sflag (!%p142_p9), [#allocation3], %s162_s17 }
  0x11   : > { %s439_s25 = sshll.u32 (!%p142_p9), %s853_s20, 4  ;;  %s726_s30 = smov (!%p142_p9), [#allocation2]   ;;  %s875_s25 = int_to_ptr.vmem [resolvable:$true] %s439_s25 }
  0x12   : > { %s664_s29 = scalar_lea.vmem (!%p142_p9), %s875_s25, 2048  ;;  %s668_s4 = sshll.u32 (!%p142_p9), %s726_s30, 4  ;;  %s669_s4 = int_to_ptr.vmem [resolvable:$false] %s668_s4 }
  0x13   : > { %v191_v0 = vld [vmem:[%s923_s1 + $0x18] sm:$0xff]  ;;  %v190_v1 = vld [vmem:[%s923_s1 + $0x10] sm:$0xff]  ;;  %v189_v2 = vld [vmem:[%s923_s1 + $0x8] sm:$0xff]  ;;  %s933_s28 = smov (!%p166_p10, %s506_s28), 31  ;;  %vm199_vm0 = vcmask 261120   ;;  %p665_p11 = scmp.ne.s32.totalorder %s875_s25, %s664_s29 }
  0x14   : > { %551 = vmatprep.subr.mxu0 %v191_v0  ;;  %583 = vmatprep.subr.mxu1 %v191_v0  ;;  %v188_v3 = vld [vmem:[%s923_s1] sm:$0xff]  ;;  %s507_s6 = sshll.u32 %s933_s28, 3  ;;  %s873_s28 = scalar_lea.hbm %s925_s3, %s530_s24 }
  0x15   : > { %552 = vmatpush3.msra.mxu0 %v191_v0  ;;  %587 = vmatpush3.msra.mxu1 %v191_v0  ;;  %s813_s9 = scalar_lea.vmem %s922_s0, %s507_s6  ;;  %v508_v20 = vld [vmem:[%s924_s2] ss:$0 sm:$0xff]  ;;  %p666_p12 = pnand %p665_p11, %p787_p5 }
  0x16   : > { %553 = vmatprep.subr.mxu0 %v190_v1  ;;  %584 = vmatprep.subr.mxu1 %v190_v1  ;;  %v172_v4 = vld [vmem:[%s813_s9] sm:$0xff]  ;;  %v173_v6 = vld [vmem:[%s813_s9 + $0x8] sm:$0xff]  ;;  %v174_v8 = vld [vmem:[%s813_s9 + $0x10] sm:$0xff]  ;;  %s670_s5 = scalar_lea.vmem %s669_s4, 4096  ;;  %p671_p0 = scmp.lt.s32.totalorder %s875_s25, %s669_s4 }
  0x17   : > { %554 = vmatpush3.msra.mxu0 %v190_v1  ;;  %588 = vmatpush3.msra.mxu1 %v190_v1  ;;  %v180_v5 = vld [vmem:[%s813_s9 + $0x40] sm:$0xff]  ;;  %v181_v7 = vld [vmem:[%s813_s9 + $0x48] sm:$0xff]  ;;  %v182_v9 = vld [vmem:[%s813_s9 + $0x50] sm:$0xff]  ;;  %p667_p13 = pneg %p666_p12  ;;  %p672_p1 = scmp.lt.s32.totalorder %s670_s5, %s664_s29 }
  0x18   : > { %555 = vmatprep.subr.mxu0 %v189_v2  ;;  %585 = vmatprep.subr.mxu1 %v189_v2  ;;  %v175_v10 = vld [vmem:[%s813_s9 + $0x18] sm:$0xff]  ;;  %v176_v12 = vld [vmem:[%s813_s9 + $0x20] sm:$0xff]  ;;  %v177_v14 = vld [vmem:[%s813_s9 + $0x28] sm:$0xff] }
  0x19   : > { %556 = vmatpush3.msra.mxu0 %v189_v2  ;;  %589 = vmatpush3.msra.mxu1 %v189_v2  ;;  %v183_v11 = vld [vmem:[%s813_s9 + $0x58] sm:$0xff]  ;;  %v184_v13 = vld [vmem:[%s813_s9 + $0x60] sm:$0xff]  ;;  %v185_v15 = vld [vmem:[%s813_s9 + $0x68] sm:$0xff]  ;;  %p673_p2 = por %p672_p1, %p671_p0 }
  0x1a   : > { %557 = vmatprep.subr.mxu0 %v188_v3  ;;  %586 = vmatprep.subr.mxu1 %v188_v3  ;;  %v178_v16 = vld [vmem:[%s813_s9 + $0x30] sm:$0xff]  ;;  %v179_v18 = vld [vmem:[%s813_s9 + $0x38] sm:$0xff] }
  0x1b   : > { %558 = vmatpush3.msra.mxu0 %v188_v3  ;;  %590 = vmatpush3.msra.mxu1 %v188_v3  ;;  %v186_v17 = vld [vmem:[%s813_s9 + $0x70] sm:$0xff]  ;;  %v187_v19 = vld [vmem:[%s813_s9 + $0x78] sm:$0xff]  ;;  %p674_p3 = pnand %p673_p2, %p667_p13 }
  0x1c   : > { %559 = vmatprep.mubr.msk.f32.mxu0 %vm199_vm0, %v172_v4  ;;  %571 = vmatprep.mubr.msk.f32.mxu1 %vm199_vm0, %v180_v5 }
  0x1d   : > { %560 = vmatmul.mubr.msk.f32.vlgmr.msra.gmra.mxu0 %vm199_vm0, %v173_v6  ;;  %572 = vmatmul.mubr.msk.f32.vlgmr.msra.gmra.mxu1 %vm199_vm0, %v181_v7 }
  0x1e   : > { %562 = vmatprep.mubr.msk.f32.mxu0 %vm199_vm0, %v174_v8  ;;  %574 = vmatprep.mubr.msk.f32.mxu1 %vm199_vm0, %v182_v9 }
  0x21   : > { %563 = vmatmul.mubr.msk.f32.gmra.mxu0 %vm199_vm0, %v175_v10  ;;  %575 = vmatmul.mubr.msk.f32.gmra.mxu1 %vm199_vm0, %v183_v11 }
  0x22   : > { %565 = vmatprep.mubr.msk.f32.mxu0 %vm199_vm0, %v176_v12  ;;  %577 = vmatprep.mubr.msk.f32.mxu1 %vm199_vm0, %v184_v13 }
  0x25   : > { %566 = vmatmul.mubr.msk.f32.gmra.mxu0 %vm199_vm0, %v177_v14  ;;  %578 = vmatmul.mubr.msk.f32.gmra.mxu1 %vm199_vm0, %v185_v15 }
  0x26   : > { %568 = vmatprep.mubr.msk.f32.mxu0 %vm199_vm0, %v178_v16  ;;  %580 = vmatprep.mubr.msk.f32.mxu1 %vm199_vm0, %v186_v17 }
  0x29   : > { %569 = vmatmul.mubr.msk.f32.gmra.mxu0 %vm199_vm0, %v179_v18  ;;  %581 = vmatmul.mubr.msk.f32.gmra.mxu1 %vm199_vm0, %v187_v19 }
  0xdd   : > { %v561_v21 = vpop.f32.mrf.mxu0  ;;  %v573_v22 = vpop.f32.mrf.mxu1 }
  0xde   : > { %v320_v23 = vadd.f32 %v561_v21, %v508_v20  ;;  %v360_v24 = vadd.f32 %v573_v22, %v508_v20 }
  0xdf   : > { %v314_v25 = vpop.f32.mrf.mxu0  ;;  %v354_v26 = vpop.f32.mrf.mxu1 }
  0xe0   : > { %632 = vtanh.f32 %v320_v23  ;;  %v315_v27 = vadd.f32 %v508_v20, %v314_v25  ;;  %v355_v28 = vadd.f32 %v508_v20, %v354_v26 }
  0xe1   : > { %634 = vtanh.f32 %v360_v24  ;;  %v564_v29 = vpop.f32.mrf.mxu0  ;;  %v576_v30 = vpop.f32.mrf.mxu1 }
  0xe2   : > { %636 = vtanh.f32 %v315_v27  ;;  %v330_v31 = vadd.f32 %v564_v29, %v508_v20  ;;  %v370_v32 = vadd.f32 %v576_v30, %v508_v20 }
  0xe3   : > { %638 = vtanh.f32 %v355_v28  ;;  %v324_v33 = vpop.f32.mrf.mxu0  ;;  %v364_v34 = vpop.f32.mrf.mxu1 }
  0xe4   : > { %640 = vtanh.f32 %v330_v31  ;;  %v325_v35 = vadd.f32 %v508_v20, %v324_v33  ;;  %v365_v36 = vadd.f32 %v508_v20, %v364_v34 }
  0xe5   : > { %642 = vtanh.f32 %v370_v32  ;;  %v567_v37 = vpop.f32.mrf.mxu0  ;;  %v579_v38 = vpop.f32.mrf.mxu1 }
  0xe6   : > { %644 = vtanh.f32 %v325_v35  ;;  %v340_v39 = vadd.f32 %v567_v37, %v508_v20  ;;  %v380_v40 = vadd.f32 %v579_v38, %v508_v20 }
  0xe7   : > { %646 = vtanh.f32 %v365_v36  ;;  %v334_v41 = vpop.f32.mrf.mxu0  ;;  %v374_v42 = vpop.f32.mrf.mxu1 }
  0xe8   : > { %648 = vtanh.f32 %v340_v39  ;;  %v335_v43 = vadd.f32 %v508_v20, %v334_v41  ;;  %v375_v44 = vadd.f32 %v508_v20, %v374_v42 }
  0xe9   : > { %650 = vtanh.f32 %v380_v40  ;;  %v570_v45 = vpop.f32.mrf.mxu0  ;;  %v582_v46 = vpop.f32.mrf.mxu1 }
  0xea   : > { %652 = vtanh.f32 %v335_v43  ;;  %v350_v47 = vadd.f32 %v570_v45, %v508_v20  ;;  %v390_v48 = vadd.f32 %v582_v46, %v508_v20 }
  0xeb   : > { %654 = vtanh.f32 %v375_v44  ;;  %v344_v49 = vpop.f32.mrf.mxu0  ;;  %v384_v50 = vpop.f32.mrf.mxu1 }
  0xec   : > { %656 = vtanh.f32 %v350_v47  ;;  %v345_v51 = vadd.f32 %v508_v20, %v344_v49  ;;  %v385_v52 = vadd.f32 %v508_v20, %v384_v50 }
  0xed   : > { %v633_v53 = vpop.eup %632  ;;  %658 = vtanh.f32 %v390_v48 }
  0xee   : > { %v635_v54 = vpop.eup %634  ;;  %410 = vst [vmem:[%s853_s20 + $0x8] sm:$0xff] %v633_v53  ;;  %660 = vtanh.f32 %v345_v51 }
  0xef   : > { %v637_v55 = vpop.eup %636  ;;  %418 = vst [vmem:[%s853_s20 + $0x48] sm:$0xff] %v635_v54  ;;  %662 = vtanh.f32 %v385_v52 }
  0xf0   : > { %v639_v56 = vpop.eup %638  ;;  %409 = vst [vmem:[%s853_s20] sm:$0xff] %v637_v55 }
  0xf1   : > { %v641_v57 = vpop.eup %640  ;;  %417 = vst [vmem:[%s853_s20 + $0x40] sm:$0xff] %v639_v56 }
  0xf2   : > { %v643_v58 = vpop.eup %642  ;;  %412 = vst [vmem:[%s853_s20 + $0x18] sm:$0xff] %v641_v57 }
  0xf3   : > { %v645_v59 = vpop.eup %644  ;;  %420 = vst [vmem:[%s853_s20 + $0x58] sm:$0xff] %v643_v58 }
  0xf4   : > { %v647_v60 = vpop.eup %646  ;;  %411 = vst [vmem:[%s853_s20 + $0x10] sm:$0xff] %v645_v59 }
  0xf5   : > { %v649_v61 = vpop.eup %648  ;;  %419 = vst [vmem:[%s853_s20 + $0x50] sm:$0xff] %v647_v60 }
  0xf6   : > { %v651_v62 = vpop.eup %650  ;;  %414 = vst [vmem:[%s853_s20 + $0x28] sm:$0xff] %v649_v61 }
  0xf7   : > { %v653_v63 = vpop.eup %652  ;;  %422 = vst [vmem:[%s853_s20 + $0x68] sm:$0xff] %v651_v62 }
  0xf8   : > { %v655_v0 = vpop.eup %654  ;;  %413 = vst [vmem:[%s853_s20 + $0x20] sm:$0xff] %v653_v63 }
  0xf9   : > { %v657_v1 = vpop.eup %656  ;;  %421 = vst [vmem:[%s853_s20 + $0x60] sm:$0xff] %v655_v0 }
  0xfa   : > { %v659_v2 = vpop.eup %658  ;;  %416 = vst [vmem:[%s853_s20 + $0x38] sm:$0xff] %v657_v1 }
  0xfb   : > { %v661_v3 = vpop.eup %660  ;;  %424 = vst [vmem:[%s853_s20 + $0x78] sm:$0xff] %v659_v2 }
  0xfc   : > { %v663_v4 = vpop.eup %662  ;;  %415 = vst [vmem:[%s853_s20 + $0x30] sm:$0xff] %v661_v3 }
  0xfd   : > { %423 = vst [vmem:[%s853_s20 + $0x70] sm:$0xff] %v663_v4 }
  0xfe   : > { %677 = shalt.err (!%p674_p3)
}
  0xff   : > { %s678_s6 = scalar_lea.hbm %s873_s28, 2048  ;;  %s682_s9 = scalar_lea.hbm %s925_s3, 4096 }
 0x100   : > { %p679_p4 = scmp.ne.s32.totalorder %s873_s28, %s678_s6  ;;  %p683_p9 = scmp.lt.s32.totalorder %s873_s28, %s925_s3 }
 0x101   : > { %p684_p10 = scmp.lt.s32.totalorder %s682_s9, %s678_s6 }
 0x102   : > { %p680_p7 = pnand %p679_p4, %p787_p5 }
 0x103   : > { %p685_p11 = por %p684_p10, %p683_p9 }
 0x104   : > { %p681_p8 = pneg %p680_p7 }
 0x106   : > { %p686_p12 = pnand %p685_p11, %p681_p8 }
 0x108   : > { %689 = shalt.err (!%p686_p12)
}
 0x109   : > { %s727_s17 = smov 128   ;;  %s728_s19 = smov 8  }
 0x10a   : > { %591 = dma.vmem_to_hbm [thread:$0]  (%p787_p5), %s875_s25, 2048, %s873_s28, %s882_s16, %s727_s17, %s727_s17, %s728_s19  }
 0x10b PF: > { %p597_p13 = scmp.ge.s32.totalorder %s724_s15, 2  ;;  %s454_s20 = sand.u32 1, %s712_s12  }
 0x10c   : > { %s455_s24 = scalar_lea.sflag [#allocation3], %s454_s20 }
 0x10d   : > { %p594_p0 = pnand %p597_p13, %p791_p6 }
 0x10f   : > { %p595_p1 = pneg %p594_p0 }
 0x111   : > { %707 = dma.done.wait (%p595_p1), %s455_s24, 2048  }
 0x112   : > { %709 = vsyncadd (%p595_p1), %s455_s24, 4294965248  ;;  %p13_p2 = scmp.ge.s32.totalorder %s774_s18, 4   ;;  %s928_s12 = smov %s716_s13 }
 0x113   : > { %s929_s13 = smov %s720_s14  ;;  %s930_s14 = smov %s785_s21 }
 0x114   : > { %s931_s15 = smov %s774_s18  ;;  %15 = sbr.rel (!%p13_p2) target bundleno = 3 (0x3), region = 67 }
 0x119   :  { %460 = vsyncpa [#allocation3], 1 }
 0x11a   :  { %462 = vsyncpa [#allocation3 + $0x1], 1 }

</bundles_post_ra>
